<compile_context>
chip_gen: v7x
topology: tpu7x:2x2x1
jax: 0.10.0
libtpu: 0.0.40
codegen_flags: <defaults>
</compile_context>

<pallas_src>
import jax
import jax.numpy as jnp
from jax.experimental import pallas as pl
from jax.experimental.pallas import tpu as pltpu

SEQ = 197  # fused sequence length
DIM = 512  # fused feature dim


def _fusion_kernel(w_ref, clip_ref, dino_ref, out_ref):
    # w_ref              : (2,) f32 in SMEM  -> [clip_weight, dino_weight]
    # clip_ref / out_ref : (B_TILE, SEQ, DIM) VMEM tiles
    # dino_ref           : (B_TILE, >=SEQ, DIM) VMEM tile of the unsliced dino
    w_clip = w_ref[0]
    w_dino = w_ref[1]
    clip = clip_ref[...].astype(jnp.float32)
    dino = dino_ref[:, :SEQ, :].astype(jnp.float32)  # the [:, :197, :512] view
    out_ref[...] = (w_clip * clip + w_dino * dino).astype(out_ref.dtype)


def _vmem_capacity_bytes() -> int:
    """Physical VMEM per TensorCore; conservative fallback = 64 MiB (v7x)."""
    try:
        info = pltpu.get_tpu_info()
        cap = getattr(info, "vmem_capacity_bytes", None)
        if cap:
            return int(cap)
    except Exception:
        pass
    return 64 * 1024 * 1024


def _pick_b_tile(bs: int, cap: int) -> int:
    """Pick the per-step batch tile.

    Tiny cost model in batch-element units: grid steps are split round-robin
    across (up to) two TensorCores, each step pays ~1 element-equivalent of
    pipeline overhead (~0.35 us), and a partially-filled final tile wastes a
    bit of DMA.  Prefers exact divisors of bs and even, balanced grids.
    """
    cap = max(1, min(cap, bs))
    if bs <= 1:
        return 1
    best_t, best_cost = 1, None
    for t in range(1, cap + 1):
        steps = -(-bs // t)
        if steps < 2:  # keep >= 2 grid steps so both v7x TensorCores get work
            continue
        waste = steps * t - bs
        cost = (-(-steps // 2)) * (t + 1) + 0.25 * waste
        if best_cost is None or cost < best_cost:
            best_t, best_cost = t, cost
    return best_t


def weighted_sum_fusion(clip_feats, dino_feats, clip_weight, dino_weight,
                        *, b_tile=None):
    """clip_feats: [bs, 197, 512]; dino_feats: [bs, >=197, >=512] (unsliced)."""
    bs, seq, dim = clip_feats.shape
    assert seq == SEQ and dim == DIM, "clip_feats must be [bs, 197, 512]"
    dino_seq, dino_dim = dino_feats.shape[1], dino_feats.shape[2]
    assert dino_seq >= SEQ and dino_dim >= DIM

    out_dtype = clip_feats.dtype

    # Dtype-aware sublane padding for the dino row window: the second-to-last
    # block dim must be a multiple of the packed sublane tile (8 rows for
    # 4-byte dtypes, 16 for bf16/fp16, 32 for int8/fp8) unless it equals the
    # full array dim.
    d_item = jnp.dtype(dino_feats.dtype).itemsize
    sublane = max(8, 32 // max(1, d_item))
    seq_pad = (-(-SEQ // sublane)) * sublane
    dino_blk_seq = dino_seq if dino_seq <= seq_pad else seq_pad

    # VMEM-aware batch tile: double-buffered clip + dino + out tiles per
    # batch element, against ~75% of physical VMEM (leaves Mosaic headroom).
    per_b = 2 * (SEQ * DIM * jnp.dtype(clip_feats.dtype).itemsize
                 + dino_blk_seq * DIM * d_item
                 + SEQ * DIM * jnp.dtype(out_dtype).itemsize)
    vmem_cap = _vmem_capacity_bytes()
    budget = int(vmem_cap * 3 // 4)          # ~48 MiB on v7x, ~96 MiB v5e/v6e
    hard_cap = 32 if vmem_cap >= 100 * 1024 * 1024 else 16
    cap = int(max(1, min(hard_cap, (budget - 4 * 1024 * 1024) // per_b)))
    if b_tile is None:
        b_tile = _pick_b_tile(bs, cap)
    grid = (pl.cdiv(bs, b_tile),)

    # Pack both learnable scalars into one small SMEM operand.
    weights = jnp.stack([jnp.asarray(clip_weight, jnp.float32).reshape(()),
                         jnp.asarray(dino_weight, jnp.float32).reshape(())])

    return pl.pallas_call(
        _fusion_kernel,
        out_shape=jax.ShapeDtypeStruct((bs, SEQ, DIM), out_dtype),
        grid=grid,
        in_specs=[
            pl.BlockSpec(memory_space=pltpu.SMEM),                   # weights (2,)
            pl.BlockSpec((b_tile, SEQ, DIM), lambda b: (b, 0, 0)),            # clip
            pl.BlockSpec((b_tile, dino_blk_seq, DIM), lambda b: (b, 0, 0)),   # dino
        ],
        out_specs=pl.BlockSpec((b_tile, SEQ, DIM), lambda b: (b, 0, 0)),
        compiler_params=pltpu.CompilerParams(
            dimension_semantics=("parallel",),
            vmem_limit_bytes=int(budget),
        ),
    )(weights, clip_feats, dino_feats)


if __name__ == "__main__":
    key = jax.random.PRNGKey(0)
    k1, k2 = jax.random.split(key)

    bs = 2
    # clip features: [bs, 197, 512]; dino features deliberately larger so the
    # [:, :197, :512] window is exercised, as in the PyTorch module.
    clip_feats = jax.random.normal(k1, (bs, SEQ, DIM), dtype=jnp.float32)
    dino_feats = jax.random.normal(k2, (bs, 257, 768), dtype=jnp.float32)

    # Deterministic parameter init, matching nn.Parameter(torch.tensor(0.5)).
    clip_weight = jnp.float32(0.5)
    dino_weight = jnp.float32(0.5)

    # f32 path
    out = weighted_sum_fusion(clip_feats, dino_feats, clip_weight, dino_weight)
    out = jax.block_until_ready(out)
    ref = clip_weight * clip_feats + dino_weight * dino_feats[:, :SEQ, :DIM]
    assert out.shape == (bs, SEQ, DIM)
    assert jnp.allclose(out, ref, atol=1e-6, rtol=1e-6)

    # bf16 path: exercises the dtype-aware (16-row) dino sublane padding.
    clip_bf = clip_feats.astype(jnp.bfloat16)
    dino_bf = dino_feats.astype(jnp.bfloat16)
    out_bf = jax.block_until_ready(
        weighted_sum_fusion(clip_bf, dino_bf, clip_weight, dino_weight))
    ref_bf = (clip_weight * clip_bf.astype(jnp.float32)
              + dino_weight * dino_bf[:, :SEQ, :DIM].astype(jnp.float32)
              ).astype(jnp.bfloat16)
    assert out_bf.shape == (bs, SEQ, DIM)
    assert jnp.allclose(out_bf.astype(jnp.float32), ref_bf.astype(jnp.float32),
                        atol=2e-2, rtol=2e-2)

    print("KERNEL_OK")
</pallas_src>

<mosaic_0001>
module attributes {stable_mosaic.version = 11 : i64} {
  func.func @_fusion_kernel(%arg0: i32, %arg1: memref<2xf32, #tpu.memory_space<smem>>, %arg2: memref<1x197x512xf32, #tpu.memory_space<vmem>>, %arg3: memref<1x200x512xf32, #tpu.memory_space<vmem>>, %arg4: memref<1x197x512xf32, #tpu.memory_space<vmem>>) attributes {dimension_semantics = [#tpu.dimension_semantics<parallel>], iteration_bounds = array<i64: 2>, scalar_prefetch = 0 : i64, scratch_operands = 0 : i64, tpu.core_type = #tpu.core_type<tc>, window_params = [{transform_indices = @transform_0, window_bounds = array<i64: 2>}, {transform_indices = @transform_1, window_bounds = array<i64: 1, 197, 512>}, {transform_indices = @transform_2, window_bounds = array<i64: 1, 200, 512>}, {transform_indices = @transform_3, window_bounds = array<i64: 1, 197, 512>}]} {
    %c0 = arith.constant 0 : index
    %0 = memref.load %arg1[%c0] : memref<2xf32, #tpu.memory_space<smem>>
    %c1 = arith.constant 1 : index
    %1 = memref.load %arg1[%c1] : memref<2xf32, #tpu.memory_space<smem>>
    %c0_0 = arith.constant 0 : index
    %c0_1 = arith.constant 0 : index
    %c0_2 = arith.constant 0 : index
    %2 = vector.load %arg2[%c0_0, %c0_1, %c0_2] : memref<1x197x512xf32, #tpu.memory_space<vmem>>, vector<1x197x512xf32>
    %c0_3 = arith.constant 0 : index
    %c0_4 = arith.constant 0 : index
    %c0_5 = arith.constant 0 : index
    %3 = vector.load %arg3[%c0_3, %c0_4, %c0_5] : memref<1x200x512xf32, #tpu.memory_space<vmem>>, vector<1x197x512xf32>
    %4 = vector.broadcast %0 : f32 to vector<1x197x512xf32>
    %5 = arith.mulf %4, %2 : vector<1x197x512xf32>
    %6 = vector.broadcast %1 : f32 to vector<1x197x512xf32>
    %7 = arith.mulf %6, %3 : vector<1x197x512xf32>
    %8 = arith.addf %5, %7 : vector<1x197x512xf32>
    %c0_6 = arith.constant 0 : index
    %c0_7 = arith.constant 0 : index
    %c0_8 = arith.constant 0 : index
    %9 = vector.load %arg4[%c0_6, %c0_7, %c0_8] : memref<1x197x512xf32, #tpu.memory_space<vmem>>, vector<1x197x512xf32>
    tpu.vector_store %arg4[%c0_6, %c0_7, %c0_8], %8 {strides = array<i32>} : memref<1x197x512xf32, #tpu.memory_space<vmem>>, vector<1x197x512xf32>,
    return
  }
  func.func @transform_0(%arg0: i32) -> i32 {
    %c0_i32 = arith.constant 0 : i32
    %c0_i32_0 = arith.constant 0 : i32
    return %c0_i32 : i32
  }
  func.func @transform_1(%arg0: i32) -> (i32, i32, i32) {
    %c0_i32 = arith.constant 0 : i32
    %c0_i32_0 = arith.constant 0 : i32
    %c0_i32_1 = arith.constant 0 : i32
    return %arg0, %c0_i32, %c0_i32_0 : i32, i32, i32
  }
  func.func @transform_2(%arg0: i32) -> (i32, i32, i32) {
    %c0_i32 = arith.constant 0 : i32
    %c0_i32_0 = arith.constant 0 : i32
    %c0_i32_1 = arith.constant 0 : i32
    return %arg0, %c0_i32, %c0_i32_0 : i32, i32, i32
  }
  func.func @transform_3(%arg0: i32) -> (i32, i32, i32) {
    %c0_i32 = arith.constant 0 : i32
    %c0_i32_0 = arith.constant 0 : i32
    %c0_i32_1 = arith.constant 0 : i32
    return %arg0, %c0_i32, %c0_i32_0 : i32, i32, i32
  }
}

</mosaic_0001>

<bundles_post_ra>
// kernel: tpu_custom_call.1
= control target key start
LH: loop header
LB: loop body
LE: loop exit
PB: predicated region body
PF: predicated region fallthrough
CT: control target
= control target key end

     0   :  { %8 = vsyncpa [#allocation3], 0  ;;  %s1228_s12 = smov 0   ;;  %s1230_s13 = smov 0   ;;  %s2023_s0 = inlined_call_operand.vmem [shape: f32[2], index: 0, kind: input, shape index: {}]   ;;  %s2024_s1 = inlined_call_operand.vmem [shape: f32[2,197,512], index: 1, kind: input, shape index: {}]   ;;  %s2025_s2 = inlined_call_operand.vmem [shape: f32[2,257,768], index: 2, kind: input, shape index: {}]   ;;  %s2026_s3 = inlined_call_operand.vmem [shape: f32[2,197,512], index: 3, kind: output, shape index: {}]  }
   0x1   :  { %s1232_s14 = smov 0  }
   0x2 LB: > { %s1244_s15 = sadd.s32 4294967295, %s1205_s14   ;;  %s1247_s16 = sadd.s32 1, %s1205_s14   ;;  %s1205_s14 = sphi %s1232_s14, %s2031_s14   ;;  %s1201_s13 = sphi %s1230_s13, %s2030_s13   ;;  %s1197_s12 = sphi %s1228_s12, %s2029_s12  }
   0x3   : > { %s65_s17 = ssub.s32 %s1205_s14, %s1247_s16  ;;  %s68_s18 = sadd.s32 1, %s1201_s13 }
   0x4   : > { %p66_p0 = scmp.eq.s32.totalorder %s65_s17, 0  ;;  %p75_p1 = scmp.ne.s32.totalorder %s1201_s13, %s1197_s12 }
   0x5   : > { %p76_p2 = scmp.eq.s32.totalorder %s1205_s14, 0  ;;  %p1114_p3 = scmp.ge.s32.totalorder %s1205_s14, 1 }
   0x6   : > { %s1257_s19 = scalar_select %p66_p0, %s1201_s13, %s68_s18  }
   0x7   : > { %p1259_p4 = por %p76_p2, %p75_p1  ;;  %p118_p5 = scmp.lt.s32.totalorder %s1205_s14, 3 }
   0x8   : > { %p1137_p6 = scmp.eq.s32.totalorder %s1244_s15, 0  ;;  %s131_s24 = sshll.u32 %s2023_s0, 4  ;;  %s132_s24 = int_to_ptr.vmem [resolvable:$true] %s131_s24 }
   0x9   : > { %p1265_p7 = pnand %p1114_p3, %p118_p5  ;;  %s1164_s25 = scalar_lea.vmem %s132_s24, 16 }
   0xa   : > { %p1165_p10 = scmp.ne.s32.totalorder %s132_s24, %s1164_s25  ;;  %p1172_p0 = scmp.lt.s32.totalorder %s132_s24, %s132_s24 }
   0xb   : > { %p1133_p8 = pneg %p1265_p7  ;;  %p1173_p1 = scmp.lt.s32.totalorder %s1164_s25, %s1164_s25 }
   0xd   : > { %p1134_p9 = pnand %p1137_p6, %p1133_p8  ;;  %p1174_p2 = por %p1173_p1, %p1172_p0 }
   0xf   : > { %p1166_p11 = pneg %p1134_p9 }
  0x11   : > { %p1167_p12 = pnand %p1166_p11, %p1165_p10 }
  0x13   : > { %p1168_p13 = pneg %p1167_p12 }
  0x15   : > { %p1175_p3 = pnand %p1174_p2, %p1168_p13 }
  0x17   : > { %1178 = shalt.err (!%p1175_p3)
}
  0x18   : > { %s1207_s26 = smov [#allocation2]   ;;  %p1116_p5 = scmp.ge.s32.totalorder %s1205_s14, 2 }
  0x19   : > { %1136 = dma.vmem_to_smem (!%p1134_p9), %s132_s24, 16, %s1207_s26, [#allocation3]  }
  0x1a   : > { %138 = sbr.rel (%p1116_p5) target bundleno = 88 (0x58), region = 20 }
  0x21   : > { %149 = sbr.rel (!%p1259_p4) target bundleno = 88 (0x58), region = 28  ;;  %s151_s27 = sand.u32 (%p1259_p4), 1, %s1201_s13  }
  0x22   : > { %s1126_s28 = smul.u32 (%p1259_p4), 1584, %s1205_s14 }
  0x23   : > { %s1125_s29 = smul.u32 (%p1259_p4), 800, %s151_s27 }
  0x24   : > { %s1284_s5 = scalar_lea.vmem (%p1259_p4), %s2025_s2, %s1126_s28 }
  0x25   : > { %v169_v0 = vld [vmem:[%s1284_s5] sm:$0xff] (%p1259_p4)  ;;  %v171_v1 = vld [vmem:[%s1284_s5 + $0x8] sm:$0xff] (%p1259_p4)  ;;  %v173_v2 = vld [vmem:[%s1284_s5 + $0x10] sm:$0xff] (%p1259_p4)  ;;  %s1289_s6 = scalar_lea.vmem (%p1259_p4), [#allocation4], %s1125_s29 }
  0x26   : > { %170 = vst [vmem:[%s1289_s6] sm:$0xff] (%p1259_p4), %v169_v0  ;;  %172 = vst [vmem:[%s1289_s6 + $0x8] sm:$0xff] (%p1259_p4), %v171_v1  ;;  %v175_v3 = vld [vmem:[%s1284_s5 + $0x18] sm:$0xff] (%p1259_p4)  ;;  %v177_v4 = vld [vmem:[%s1284_s5 + $0x30] sm:$0xff] (%p1259_p4) }
  0x27   : > { %174 = vst [vmem:[%s1289_s6 + $0x10] sm:$0xff] (%p1259_p4), %v173_v2  ;;  %v179_v5 = vld [vmem:[%s1284_s5 + $0x38] sm:$0xff] (%p1259_p4)  ;;  %176 = vst [vmem:[%s1289_s6 + $0x18] sm:$0xff] (%p1259_p4), %v175_v3  ;;  %v181_v6 = vld [vmem:[%s1284_s5 + $0x40] sm:$0xff] (%p1259_p4) }
  0x28   : > { %178 = vst [vmem:[%s1289_s6 + $0x20] sm:$0xff] %v177_v4  ;;  %180 = vst [vmem:[%s1289_s6 + $0x28] sm:$0xff] %v179_v5  ;;  %v183_v7 = vld [vmem:[%s1284_s5 + $0x48] sm:$0xff]  ;;  %v185_v8 = vld [vmem:[%s1284_s5 + $0x60] sm:$0xff] }
  0x29   : > { %182 = vst [vmem:[%s1289_s6 + $0x30] sm:$0xff] %v181_v6  ;;  %184 = vst [vmem:[%s1289_s6 + $0x38] sm:$0xff] %v183_v7  ;;  %v187_v9 = vld [vmem:[%s1284_s5 + $0x68] sm:$0xff]  ;;  %v189_v10 = vld [vmem:[%s1284_s5 + $0x70] sm:$0xff] }
  0x2a   : > { %186 = vst [vmem:[%s1289_s6 + $0x40] sm:$0xff] %v185_v8  ;;  %v191_v11 = vld [vmem:[%s1284_s5 + $0x78] sm:$0xff]  ;;  %188 = vst [vmem:[%s1289_s6 + $0x48] sm:$0xff] %v187_v9  ;;  %v193_v12 = vld [vmem:[%s1284_s5 + $0x90] sm:$0xff] }
  0x2b   : > { %190 = vst [vmem:[%s1289_s6 + $0x50] sm:$0xff] %v189_v10  ;;  %192 = vst [vmem:[%s1289_s6 + $0x58] sm:$0xff] %v191_v11  ;;  %v195_v13 = vld [vmem:[%s1284_s5 + $0x98] sm:$0xff]  ;;  %v197_v14 = vld [vmem:[%s1284_s5 + $0xa0] sm:$0xff] }
  0x2c   : > { %194 = vst [vmem:[%s1289_s6 + $0x60] sm:$0xff] %v193_v12  ;;  %196 = vst [vmem:[%s1289_s6 + $0x68] sm:$0xff] %v195_v13  ;;  %v199_v15 = vld [vmem:[%s1284_s5 + $0xa8] sm:$0xff]  ;;  %v201_v16 = vld [vmem:[%s1284_s5 + $0xc0] sm:$0xff] }
  0x2d   : > { %198 = vst [vmem:[%s1289_s6 + $0x70] sm:$0xff] %v197_v14  ;;  %v203_v17 = vld [vmem:[%s1284_s5 + $0xc8] sm:$0xff]  ;;  %200 = vst [vmem:[%s1289_s6 + $0x78] sm:$0xff] %v199_v15  ;;  %v205_v18 = vld [vmem:[%s1284_s5 + $0xd0] sm:$0xff] }
  0x2e   : > { %202 = vst [vmem:[%s1289_s6 + $0x80] sm:$0xff] %v201_v16  ;;  %204 = vst [vmem:[%s1289_s6 + $0x88] sm:$0xff] %v203_v17  ;;  %v207_v19 = vld [vmem:[%s1284_s5 + $0xd8] sm:$0xff]  ;;  %v209_v20 = vld [vmem:[%s1284_s5 + $0xf0] sm:$0xff] }
  0x2f   : > { %206 = vst [vmem:[%s1289_s6 + $0x90] sm:$0xff] %v205_v18  ;;  %208 = vst [vmem:[%s1289_s6 + $0x98] sm:$0xff] %v207_v19  ;;  %v211_v21 = vld [vmem:[%s1284_s5 + $0xf8] sm:$0xff]  ;;  %v213_v22 = vld [vmem:[%s1284_s5 + $0x100] sm:$0xff] }
  0x30   : > { %210 = vst [vmem:[%s1289_s6 + $0xa0] sm:$0xff] %v209_v20  ;;  %v215_v23 = vld [vmem:[%s1284_s5 + $0x108] sm:$0xff]  ;;  %212 = vst [vmem:[%s1289_s6 + $0xa8] sm:$0xff] %v211_v21  ;;  %v217_v24 = vld [vmem:[%s1284_s5 + $0x120] sm:$0xff] }
  0x31   : > { %214 = vst [vmem:[%s1289_s6 + $0xb0] sm:$0xff] %v213_v22  ;;  %216 = vst [vmem:[%s1289_s6 + $0xb8] sm:$0xff] %v215_v23  ;;  %v219_v25 = vld [vmem:[%s1284_s5 + $0x128] sm:$0xff]  ;;  %v221_v26 = vld [vmem:[%s1284_s5 + $0x130] sm:$0xff] }
  0x32   : > { %218 = vst [vmem:[%s1289_s6 + $0xc0] sm:$0xff] %v217_v24  ;;  %220 = vst [vmem:[%s1289_s6 + $0xc8] sm:$0xff] %v219_v25  ;;  %v223_v27 = vld [vmem:[%s1284_s5 + $0x138] sm:$0xff]  ;;  %v225_v28 = vld [vmem:[%s1284_s5 + $0x150] sm:$0xff] }
  0x33   : > { %222 = vst [vmem:[%s1289_s6 + $0xd0] sm:$0xff] %v221_v26  ;;  %v227_v29 = vld [vmem:[%s1284_s5 + $0x158] sm:$0xff]  ;;  %224 = vst [vmem:[%s1289_s6 + $0xd8] sm:$0xff] %v223_v27  ;;  %v229_v30 = vld [vmem:[%s1284_s5 + $0x160] sm:$0xff] }
  0x34   : > { %226 = vst [vmem:[%s1289_s6 + $0xe0] sm:$0xff] %v225_v28  ;;  %228 = vst [vmem:[%s1289_s6 + $0xe8] sm:$0xff] %v227_v29  ;;  %v231_v31 = vld [vmem:[%s1284_s5 + $0x168] sm:$0xff]  ;;  %v233_v32 = vld [vmem:[%s1284_s5 + $0x180] sm:$0xff] }
  0x35   : > { %230 = vst [vmem:[%s1289_s6 + $0xf0] sm:$0xff] %v229_v30  ;;  %232 = vst [vmem:[%s1289_s6 + $0xf8] sm:$0xff] %v231_v31  ;;  %v235_v33 = vld [vmem:[%s1284_s5 + $0x188] sm:$0xff]  ;;  %v237_v34 = vld [vmem:[%s1284_s5 + $0x190] sm:$0xff] }
  0x36   : > { %234 = vst [vmem:[%s1289_s6 + $0x100] sm:$0xff] %v233_v32  ;;  %v239_v35 = vld [vmem:[%s1284_s5 + $0x198] sm:$0xff]  ;;  %236 = vst [vmem:[%s1289_s6 + $0x108] sm:$0xff] %v235_v33  ;;  %v241_v36 = vld [vmem:[%s1284_s5 + $0x1b0] sm:$0xff] }
  0x37   : > { %238 = vst [vmem:[%s1289_s6 + $0x110] sm:$0xff] %v237_v34  ;;  %240 = vst [vmem:[%s1289_s6 + $0x118] sm:$0xff] %v239_v35  ;;  %v243_v37 = vld [vmem:[%s1284_s5 + $0x1b8] sm:$0xff]  ;;  %v245_v38 = vld [vmem:[%s1284_s5 + $0x1c0] sm:$0xff] }
  0x38   : > { %242 = vst [vmem:[%s1289_s6 + $0x120] sm:$0xff] %v241_v36  ;;  %244 = vst [vmem:[%s1289_s6 + $0x128] sm:$0xff] %v243_v37  ;;  %v247_v39 = vld [vmem:[%s1284_s5 + $0x1c8] sm:$0xff]  ;;  %v249_v40 = vld [vmem:[%s1284_s5 + $0x1e0] sm:$0xff] }
  0x39   : > { %246 = vst [vmem:[%s1289_s6 + $0x130] sm:$0xff] %v245_v38  ;;  %v251_v41 = vld [vmem:[%s1284_s5 + $0x1e8] sm:$0xff]  ;;  %248 = vst [vmem:[%s1289_s6 + $0x138] sm:$0xff] %v247_v39  ;;  %v253_v42 = vld [vmem:[%s1284_s5 + $0x1f0] sm:$0xff] }
  0x3a   : > { %250 = vst [vmem:[%s1289_s6 + $0x140] sm:$0xff] %v249_v40  ;;  %252 = vst [vmem:[%s1289_s6 + $0x148] sm:$0xff] %v251_v41  ;;  %v255_v43 = vld [vmem:[%s1284_s5 + $0x1f8] sm:$0xff]  ;;  %v257_v44 = vld [vmem:[%s1284_s5 + $0x210] sm:$0xff] }
  0x3b   : > { %254 = vst [vmem:[%s1289_s6 + $0x150] sm:$0xff] %v253_v42  ;;  %256 = vst [vmem:[%s1289_s6 + $0x158] sm:$0xff] %v255_v43  ;;  %v259_v45 = vld [vmem:[%s1284_s5 + $0x218] sm:$0xff]  ;;  %v261_v46 = vld [vmem:[%s1284_s5 + $0x220] sm:$0xff] }
  0x3c   : > { %258 = vst [vmem:[%s1289_s6 + $0x160] sm:$0xff] %v257_v44  ;;  %v263_v47 = vld [vmem:[%s1284_s5 + $0x228] sm:$0xff]  ;;  %260 = vst [vmem:[%s1289_s6 + $0x168] sm:$0xff] %v259_v45  ;;  %v265_v48 = vld [vmem:[%s1284_s5 + $0x240] sm:$0xff] }
  0x3d   : > { %262 = vst [vmem:[%s1289_s6 + $0x170] sm:$0xff] %v261_v46  ;;  %264 = vst [vmem:[%s1289_s6 + $0x178] sm:$0xff] %v263_v47  ;;  %v267_v49 = vld [vmem:[%s1284_s5 + $0x248] sm:$0xff]  ;;  %v269_v50 = vld [vmem:[%s1284_s5 + $0x250] sm:$0xff] }
  0x3e   : > { %266 = vst [vmem:[%s1289_s6 + $0x180] sm:$0xff] %v265_v48  ;;  %268 = vst [vmem:[%s1289_s6 + $0x188] sm:$0xff] %v267_v49  ;;  %v271_v51 = vld [vmem:[%s1284_s5 + $0x258] sm:$0xff]  ;;  %v273_v52 = vld [vmem:[%s1284_s5 + $0x270] sm:$0xff] }
  0x3f   : > { %270 = vst [vmem:[%s1289_s6 + $0x190] sm:$0xff] %v269_v50  ;;  %v275_v53 = vld [vmem:[%s1284_s5 + $0x278] sm:$0xff]  ;;  %272 = vst [vmem:[%s1289_s6 + $0x198] sm:$0xff] %v271_v51  ;;  %v277_v54 = vld [vmem:[%s1284_s5 + $0x280] sm:$0xff] }
  0x40   : > { %274 = vst [vmem:[%s1289_s6 + $0x1a0] sm:$0xff] %v273_v52  ;;  %276 = vst [vmem:[%s1289_s6 + $0x1a8] sm:$0xff] %v275_v53  ;;  %v279_v55 = vld [vmem:[%s1284_s5 + $0x288] sm:$0xff]  ;;  %v281_v56 = vld [vmem:[%s1284_s5 + $0x2a0] sm:$0xff] }
  0x41   : > { %278 = vst [vmem:[%s1289_s6 + $0x1b0] sm:$0xff] %v277_v54  ;;  %280 = vst [vmem:[%s1289_s6 + $0x1b8] sm:$0xff] %v279_v55  ;;  %v283_v57 = vld [vmem:[%s1284_s5 + $0x2a8] sm:$0xff]  ;;  %v285_v58 = vld [vmem:[%s1284_s5 + $0x2b0] sm:$0xff] }
  0x42   : > { %282 = vst [vmem:[%s1289_s6 + $0x1c0] sm:$0xff] %v281_v56  ;;  %v287_v59 = vld [vmem:[%s1284_s5 + $0x2b8] sm:$0xff]  ;;  %284 = vst [vmem:[%s1289_s6 + $0x1c8] sm:$0xff] %v283_v57  ;;  %v289_v60 = vld [vmem:[%s1284_s5 + $0x2d0] sm:$0xff] }
  0x43   : > { %286 = vst [vmem:[%s1289_s6 + $0x1d0] sm:$0xff] %v285_v58  ;;  %288 = vst [vmem:[%s1289_s6 + $0x1d8] sm:$0xff] %v287_v59  ;;  %v291_v61 = vld [vmem:[%s1284_s5 + $0x2d8] sm:$0xff]  ;;  %v293_v62 = vld [vmem:[%s1284_s5 + $0x2e0] sm:$0xff] }
  0x44   : > { %290 = vst [vmem:[%s1289_s6 + $0x1e0] sm:$0xff] %v289_v60  ;;  %292 = vst [vmem:[%s1289_s6 + $0x1e8] sm:$0xff] %v291_v61  ;;  %v295_v63 = vld [vmem:[%s1284_s5 + $0x2e8] sm:$0xff]  ;;  %v297_v0 = vld [vmem:[%s1284_s5 + $0x300] sm:$0xff] }
  0x45   : > { %294 = vst [vmem:[%s1289_s6 + $0x1f0] sm:$0xff] %v293_v62  ;;  %v299_v1 = vld [vmem:[%s1284_s5 + $0x308] sm:$0xff]  ;;  %296 = vst [vmem:[%s1289_s6 + $0x1f8] sm:$0xff] %v295_v63  ;;  %v301_v2 = vld [vmem:[%s1284_s5 + $0x310] sm:$0xff] }
  0x46   : > { %298 = vst [vmem:[%s1289_s6 + $0x200] sm:$0xff] %v297_v0  ;;  %300 = vst [vmem:[%s1289_s6 + $0x208] sm:$0xff] %v299_v1  ;;  %v303_v3 = vld [vmem:[%s1284_s5 + $0x318] sm:$0xff]  ;;  %v305_v4 = vld [vmem:[%s1284_s5 + $0x330] sm:$0xff] }
  0x47   : > { %302 = vst [vmem:[%s1289_s6 + $0x210] sm:$0xff] %v301_v2  ;;  %304 = vst [vmem:[%s1289_s6 + $0x218] sm:$0xff] %v303_v3  ;;  %v307_v5 = vld [vmem:[%s1284_s5 + $0x338] sm:$0xff]  ;;  %v309_v6 = vld [vmem:[%s1284_s5 + $0x340] sm:$0xff] }
  0x48   : > { %306 = vst [vmem:[%s1289_s6 + $0x220] sm:$0xff] %v305_v4  ;;  %v311_v7 = vld [vmem:[%s1284_s5 + $0x348] sm:$0xff]  ;;  %308 = vst [vmem:[%s1289_s6 + $0x228] sm:$0xff] %v307_v5  ;;  %v313_v8 = vld [vmem:[%s1284_s5 + $0x360] sm:$0xff] }
  0x49   : > { %310 = vst [vmem:[%s1289_s6 + $0x230] sm:$0xff] %v309_v6  ;;  %312 = vst [vmem:[%s1289_s6 + $0x238] sm:$0xff] %v311_v7  ;;  %v315_v9 = vld [vmem:[%s1284_s5 + $0x368] sm:$0xff]  ;;  %v317_v10 = vld [vmem:[%s1284_s5 + $0x370] sm:$0xff] }
  0x4a   : > { %314 = vst [vmem:[%s1289_s6 + $0x240] sm:$0xff] %v313_v8  ;;  %316 = vst [vmem:[%s1289_s6 + $0x248] sm:$0xff] %v315_v9  ;;  %v319_v11 = vld [vmem:[%s1284_s5 + $0x378] sm:$0xff]  ;;  %v321_v12 = vld [vmem:[%s1284_s5 + $0x390] sm:$0xff] }
  0x4b   : > { %318 = vst [vmem:[%s1289_s6 + $0x250] sm:$0xff] %v317_v10  ;;  %v323_v13 = vld [vmem:[%s1284_s5 + $0x398] sm:$0xff]  ;;  %320 = vst [vmem:[%s1289_s6 + $0x258] sm:$0xff] %v319_v11  ;;  %v325_v14 = vld [vmem:[%s1284_s5 + $0x3a0] sm:$0xff] }
  0x4c   : > { %322 = vst [vmem:[%s1289_s6 + $0x260] sm:$0xff] %v321_v12  ;;  %324 = vst [vmem:[%s1289_s6 + $0x268] sm:$0xff] %v323_v13  ;;  %v327_v15 = vld [vmem:[%s1284_s5 + $0x3a8] sm:$0xff]  ;;  %v329_v16 = vld [vmem:[%s1284_s5 + $0x3c0] sm:$0xff] }
  0x4d   : > { %326 = vst [vmem:[%s1289_s6 + $0x270] sm:$0xff] %v325_v14  ;;  %328 = vst [vmem:[%s1289_s6 + $0x278] sm:$0xff] %v327_v15  ;;  %v331_v17 = vld [vmem:[%s1284_s5 + $0x3c8] sm:$0xff]  ;;  %v333_v18 = vld [vmem:[%s1284_s5 + $0x3d0] sm:$0xff] }
  0x4e   : > { %330 = vst [vmem:[%s1289_s6 + $0x280] sm:$0xff] %v329_v16  ;;  %v335_v19 = vld [vmem:[%s1284_s5 + $0x3d8] sm:$0xff]  ;;  %332 = vst [vmem:[%s1289_s6 + $0x288] sm:$0xff] %v331_v17  ;;  %v337_v20 = vld [vmem:[%s1284_s5 + $0x3f0] sm:$0xff] }
  0x4f   : > { %334 = vst [vmem:[%s1289_s6 + $0x290] sm:$0xff] %v333_v18  ;;  %336 = vst [vmem:[%s1289_s6 + $0x298] sm:$0xff] %v335_v19  ;;  %v339_v21 = vld [vmem:[%s1284_s5 + $0x3f8] sm:$0xff]  ;;  %v341_v22 = vld [vmem:[%s1284_s5 + $0x400] sm:$0xff] }
  0x50   : > { %338 = vst [vmem:[%s1289_s6 + $0x2a0] sm:$0xff] %v337_v20  ;;  %340 = vst [vmem:[%s1289_s6 + $0x2a8] sm:$0xff] %v339_v21  ;;  %v343_v23 = vld [vmem:[%s1284_s5 + $0x408] sm:$0xff]  ;;  %v345_v24 = vld [vmem:[%s1284_s5 + $0x420] sm:$0xff] }
  0x51   : > { %342 = vst [vmem:[%s1289_s6 + $0x2b0] sm:$0xff] %v341_v22  ;;  %v347_v25 = vld [vmem:[%s1284_s5 + $0x428] sm:$0xff]  ;;  %344 = vst [vmem:[%s1289_s6 + $0x2b8] sm:$0xff] %v343_v23  ;;  %v349_v26 = vld [vmem:[%s1284_s5 + $0x430] sm:$0xff] }
  0x52   : > { %346 = vst [vmem:[%s1289_s6 + $0x2c0] sm:$0xff] %v345_v24  ;;  %348 = vst [vmem:[%s1289_s6 + $0x2c8] sm:$0xff] %v347_v25  ;;  %v351_v27 = vld [vmem:[%s1284_s5 + $0x438] sm:$0xff]  ;;  %v353_v28 = vld [vmem:[%s1284_s5 + $0x450] sm:$0xff] }
  0x53   : > { %350 = vst [vmem:[%s1289_s6 + $0x2d0] sm:$0xff] %v349_v26  ;;  %352 = vst [vmem:[%s1289_s6 + $0x2d8] sm:$0xff] %v351_v27  ;;  %v355_v29 = vld [vmem:[%s1284_s5 + $0x458] sm:$0xff]  ;;  %v357_v30 = vld [vmem:[%s1284_s5 + $0x460] sm:$0xff] }
  0x54   : > { %354 = vst [vmem:[%s1289_s6 + $0x2e0] sm:$0xff] %v353_v28  ;;  %v359_v31 = vld [vmem:[%s1284_s5 + $0x468] sm:$0xff]  ;;  %356 = vst [vmem:[%s1289_s6 + $0x2e8] sm:$0xff] %v355_v29  ;;  %v361_v32 = vld [vmem:[%s1284_s5 + $0x480] sm:$0xff] }
  0x55   : > { %358 = vst [vmem:[%s1289_s6 + $0x2f0] sm:$0xff] %v357_v30  ;;  %360 = vst [vmem:[%s1289_s6 + $0x2f8] sm:$0xff] %v359_v31  ;;  %v363_v33 = vld [vmem:[%s1284_s5 + $0x488] sm:$0xff]  ;;  %v365_v34 = vld [vmem:[%s1284_s5 + $0x490] sm:$0xff] }
  0x56   : > { %362 = vst [vmem:[%s1289_s6 + $0x300] sm:$0xff] %v361_v32  ;;  %364 = vst [vmem:[%s1289_s6 + $0x308] sm:$0xff] %v363_v33  ;;  %v367_v35 = vld [vmem:[%s1284_s5 + $0x498] sm:$0xff] }
  0x57   : > { %366 = vst [vmem:[%s1289_s6 + $0x310] sm:$0xff] %v365_v34  ;;  %368 = vst [vmem:[%s1289_s6 + $0x318] sm:$0xff] %v367_v35 }
  0x58 PF: > { %377 = sbr.rel (%p1265_p7) target bundleno = 192 (0xc0), region = 51 }
  0x5f   : > { %1192 = dma.done.wait (%p1137_p6), [#allocation3], 16  }
  0x60   : > { %1194 = vsyncadd (%p1137_p6), [#allocation3], 4294967280  ;;  %s384_s7 = sand.u32 1, %s1197_s12  }
  0x61   : > { %s1127_s8 = smul.u32 800, %s384_s7 }
  0x63   : > { %s1495_s9 = scalar_lea.vmem [#allocation4], %s1127_s8 }
  0x64   : > { %390 = sfence }
  0x65   : > { %p413_p4 = scmp.lt.s32.totalorder %s1244_s15, 1  ;;  %s423_s10 = sld [smem:[#allocation2]]  ;;  %v525_v36 = vld [vmem:[%s1495_s9] sm:$0xff]  ;;  %v526_v37 = vld [vmem:[%s1495_s9 + $0x8] sm:$0xff]  ;;  %v527_v38 = vld [vmem:[%s1495_s9 + $0x10] sm:$0xff] }
  0x66   : > { %s1122_s11 = sld [smem:[#allocation2 + $0x1]]  ;;  %v528_v40 = vld [vmem:[%s1495_s9 + $0x18] sm:$0xff]  ;;  %v529_v41 = vld [vmem:[%s1495_s9 + $0x20] sm:$0xff]  ;;  %v530_v42 = vld [vmem:[%s1495_s9 + $0x28] sm:$0xff] }
  0x67   : > { %s2033_s15 = smov (!%p413_p4, %s1244_s15), 1  ;;  %v531_v59 = vld [vmem:[%s1495_s9 + $0x30] sm:$0xff]  ;;  %v532_v1 = vld [vmem:[%s1495_s9 + $0x38] sm:$0xff]  ;;  %v533_v3 = vld [vmem:[%s1495_s9 + $0x40] sm:$0xff] }
  0x68   : > { %s1128_s14 = smul.u32 800, %s2033_s15  ;;  %v534_v9 = vld [vmem:[%s1495_s9 + $0x48] sm:$0xff]  ;;  %v535_v15 = vld [vmem:[%s1495_s9 + $0x50] sm:$0xff]  ;;  %v536_v21 = vld [vmem:[%s1495_s9 + $0x58] sm:$0xff] }
  0x69   : > { %v537_v23 = vld [vmem:[%s1495_s9 + $0x60] sm:$0xff]  ;;  %v538_v29 = vld [vmem:[%s1495_s9 + $0x68] sm:$0xff]  ;;  %v539_v35 = vld [vmem:[%s1495_s9 + $0x70] sm:$0xff] }
  0x6a   : > { %s1505_s18 = scalar_lea.vmem %s2024_s1, %s1128_s14  ;;  %s1527_s21 = scalar_lea.vmem %s2026_s3, %s1128_s14 }
  0x6b   : > { %v1507_v39 = vstv %s423_s10  ;;  %v425_v43 = vld [vmem:[%s1505_s18] sm:$0xff]  ;;  %v426_v45 = vld [vmem:[%s1505_s18 + $0x8] sm:$0xff]  ;;  %v427_v46 = vld [vmem:[%s1505_s18 + $0x10] sm:$0xff] }
  0x6c   : > { %v1513_v44 = vstv %s1122_s11  ;;  %v626_v47 = vmul.f32 %v1507_v39, %v425_v43  ;;  %v627_v49 = vmul.f32 %v1507_v39, %v426_v45  ;;  %v428_v51 = vld [vmem:[%s1505_s18 + $0x18] sm:$0xff]  ;;  %v429_v52 = vld [vmem:[%s1505_s18 + $0x20] sm:$0xff]  ;;  %v430_v53 = vld [vmem:[%s1505_s18 + $0x28] sm:$0xff]  ;;  %v628_v54 = vmul.f32 %v1507_v39, %v427_v46 }
  0x6d   : > { %v727_v48 = vmul.f32 %v1513_v44, %v525_v36  ;;  %v728_v50 = vmul.f32 %v1513_v44, %v526_v37  ;;  %v729_v55 = vmul.f32 %v1513_v44, %v527_v38  ;;  %v629_v56 = vmul.f32 %v1507_v39, %v428_v51  ;;  %v431_v58 = vld [vmem:[%s1505_s18 + $0x30] sm:$0xff]  ;;  %v432_v60 = vld [vmem:[%s1505_s18 + $0x38] sm:$0xff]  ;;  %v433_v2 = vld [vmem:[%s1505_s18 + $0x40] sm:$0xff] }
  0x6e   : > { %v730_v57 = vmul.f32 %v1513_v44, %v528_v40  ;;  %v630_v63 = vmul.f32 %v1507_v39, %v429_v52  ;;  %v731_v0 = vmul.f32 %v1513_v44, %v529_v41  ;;  %v631_v6 = vmul.f32 %v1507_v39, %v430_v53  ;;  %v434_v8 = vld [vmem:[%s1505_s18 + $0x48] sm:$0xff]  ;;  %v435_v10 = vld [vmem:[%s1505_s18 + $0x50] sm:$0xff]  ;;  %v436_v16 = vld [vmem:[%s1505_s18 + $0x58] sm:$0xff] }
  0x6f   : > { %v827_v61 = vadd.f32 %v727_v48, %v626_v47  ;;  %v828_v62 = vadd.f32 %v728_v50, %v627_v49  ;;  %v829_v4 = vadd.f32 %v729_v55, %v628_v54  ;;  %v732_v7 = vmul.f32 %v1513_v44, %v530_v42  ;;  %v437_v22 = vld [vmem:[%s1505_s18 + $0x60] sm:$0xff]  ;;  %v438_v28 = vld [vmem:[%s1505_s18 + $0x68] sm:$0xff]  ;;  %v439_v30 = vld [vmem:[%s1505_s18 + $0x70] sm:$0xff] }
  0x70   : > { %v830_v5 = vadd.f32 %v730_v57, %v629_v56  ;;  %v831_v11 = vadd.f32 %v731_v0, %v630_v63  ;;  %v632_v12 = vmul.f32 %v1507_v39, %v431_v58  ;;  %v733_v13 = vmul.f32 %v1513_v44, %v531_v59  ;;  %v440_v36 = vld [vmem:[%s1505_s18 + $0x78] sm:$0xff]  ;;  %v441_v43 = vld [vmem:[%s1505_s18 + $0x80] sm:$0xff]  ;;  %v442_v50 = vld [vmem:[%s1505_s18 + $0x88] sm:$0xff] }
  0x71   : > { %927 = vst [vmem:[%s1527_s21] sm:$0xff] %v827_v61  ;;  %928 = vst [vmem:[%s1527_s21 + $0x8] sm:$0xff] %v828_v62  ;;  %v633_v14 = vmul.f32 %v1507_v39, %v432_v60  ;;  %v832_v17 = vadd.f32 %v732_v7, %v631_v6  ;;  %v734_v18 = vmul.f32 %v1513_v44, %v532_v1  ;;  %v540_v42 = vld [vmem:[%s1495_s9 + $0x78] sm:$0xff]  ;;  %v541_v45 = vld [vmem:[%s1495_s9 + $0x80] sm:$0xff] }
  0x72   : > { %929 = vst [vmem:[%s1527_s21 + $0x10] sm:$0xff] %v829_v4  ;;  %930 = vst [vmem:[%s1527_s21 + $0x18] sm:$0xff] %v830_v5  ;;  %v634_v19 = vmul.f32 %v1507_v39, %v433_v2  ;;  %v735_v20 = vmul.f32 %v1513_v44, %v533_v3  ;;  %v833_v24 = vadd.f32 %v733_v13, %v632_v12  ;;  %v542_v51 = vld [vmem:[%s1495_s9 + $0x88] sm:$0xff]  ;;  %v443_v52 = vld [vmem:[%s1505_s18 + $0x90] sm:$0xff] }
  0x73   : > { %931 = vst [vmem:[%s1527_s21 + $0x20] sm:$0xff] %v831_v11  ;;  %v635_v25 = vmul.f32 %v1507_v39, %v434_v8  ;;  %v736_v26 = vmul.f32 %v1513_v44, %v534_v9  ;;  %v636_v27 = vmul.f32 %v1507_v39, %v435_v10  ;;  %932 = vst [vmem:[%s1527_s21 + $0x28] sm:$0xff] %v832_v17  ;;  %v543_v57 = vld [vmem:[%s1495_s9 + $0x90] sm:$0xff]  ;;  %v444_v58 = vld [vmem:[%s1505_s18 + $0x98] sm:$0xff] }
  0x74   : > { %v834_v31 = vadd.f32 %v734_v18, %v633_v14  ;;  %v835_v32 = vadd.f32 %v735_v20, %v634_v19  ;;  %v737_v33 = vmul.f32 %v1513_v44, %v535_v15  ;;  %v637_v34 = vmul.f32 %v1507_v39, %v436_v16  ;;  %933 = vst [vmem:[%s1527_s21 + $0x30] sm:$0xff] %v833_v24  ;;  %v544_v63 = vld [vmem:[%s1495_s9 + $0x98] sm:$0xff]  ;;  %v445_v0 = vld [vmem:[%s1505_s18 + $0xa0] sm:$0xff]  ;;  %v446_v6 = vld [vmem:[%s1505_s18 + $0xa8] sm:$0xff] }
  0x75   : > { %v836_v37 = vadd.f32 %v736_v26, %v635_v25  ;;  %v738_v38 = vmul.f32 %v1513_v44, %v536_v21  ;;  %v638_v40 = vmul.f32 %v1507_v39, %v437_v22  ;;  %v739_v41 = vmul.f32 %v1513_v44, %v537_v23  ;;  %v545_v1 = vld [vmem:[%s1495_s9 + $0xa0] sm:$0xff]  ;;  %v546_v7 = vld [vmem:[%s1495_s9 + $0xa8] sm:$0xff]  ;;  %v447_v8 = vld [vmem:[%s1505_s18 + $0xb0] sm:$0xff] }
  0x76   : > { %934 = vst [vmem:[%s1527_s21 + $0x38] sm:$0xff] %v834_v31  ;;  %935 = vst [vmem:[%s1527_s21 + $0x40] sm:$0xff] %v835_v32  ;;  %v837_v46 = vadd.f32 %v737_v33, %v636_v27  ;;  %v639_v47 = vmul.f32 %v1507_v39, %v438_v28  ;;  %v740_v48 = vmul.f32 %v1513_v44, %v538_v29  ;;  %v547_v13 = vld [vmem:[%s1495_s9 + $0xb0] sm:$0xff]  ;;  %v448_v14 = vld [vmem:[%s1505_s18 + $0xb8] sm:$0xff] }
  0x77   : > { %v640_v49 = vmul.f32 %v1507_v39, %v439_v30  ;;  %936 = vst [vmem:[%s1527_s21 + $0x48] sm:$0xff] %v836_v37  ;;  %v838_v53 = vadd.f32 %v738_v38, %v637_v34  ;;  %v839_v54 = vadd.f32 %v739_v41, %v638_v40  ;;  %v741_v55 = vmul.f32 %v1513_v44, %v539_v35  ;;  %v548_v19 = vld [vmem:[%s1495_s9 + $0xb8] sm:$0xff]  ;;  %v449_v20 = vld [vmem:[%s1505_s18 + $0xc0] sm:$0xff]  ;;  %v450_v26 = vld [vmem:[%s1505_s18 + $0xc8] sm:$0xff] }
  0x78   : > { %v641_v56 = vmul.f32 %v1507_v39, %v440_v36  ;;  %937 = vst [vmem:[%s1527_s21 + $0x50] sm:$0xff] %v837_v46  ;;  %v840_v59 = vadd.f32 %v740_v48, %v639_v47  ;;  %v742_v60 = vmul.f32 %v1513_v44, %v540_v42  ;;  %v642_v61 = vmul.f32 %v1507_v39, %v441_v43  ;;  %v549_v21 = vld [vmem:[%s1495_s9 + $0xc0] sm:$0xff]  ;;  %v550_v27 = vld [vmem:[%s1495_s9 + $0xc8] sm:$0xff]  ;;  %v451_v28 = vld [vmem:[%s1505_s18 + $0xd0] sm:$0xff] }
  0x79   : > { %v743_v62 = vmul.f32 %v1513_v44, %v541_v45  ;;  %938 = vst [vmem:[%s1527_s21 + $0x58] sm:$0xff] %v838_v53  ;;  %939 = vst [vmem:[%s1527_s21 + $0x60] sm:$0xff] %v839_v54  ;;  %v841_v2 = vadd.f32 %v741_v55, %v640_v49  ;;  %v643_v3 = vmul.f32 %v1507_v39, %v442_v50  ;;  %v551_v33 = vld [vmem:[%s1495_s9 + $0xd0] sm:$0xff]  ;;  %v452_v34 = vld [vmem:[%s1505_s18 + $0xd8] sm:$0xff] }
  0x7a   : > { %v744_v4 = vmul.f32 %v1513_v44, %v542_v51  ;;  %v644_v5 = vmul.f32 %v1507_v39, %v443_v52  ;;  %940 = vst [vmem:[%s1527_s21 + $0x68] sm:$0xff] %v840_v59  ;;  %v842_v9 = vadd.f32 %v742_v60, %v641_v56  ;;  %v745_v11 = vmul.f32 %v1513_v44, %v543_v57  ;;  %v552_v40 = vld [vmem:[%s1495_s9 + $0xd8] sm:$0xff]  ;;  %v453_v41 = vld [vmem:[%s1505_s18 + $0xe0] sm:$0xff]  ;;  %v454_v48 = vld [vmem:[%s1505_s18 + $0xe8] sm:$0xff] }
  0x7b   : > { %v843_v10 = vadd.f32 %v743_v62, %v642_v61  ;;  %v645_v12 = vmul.f32 %v1507_v39, %v444_v58  ;;  %941 = vst [vmem:[%s1527_s21 + $0x70] sm:$0xff] %v841_v2  ;;  %v746_v16 = vmul.f32 %v1513_v44, %v544_v63  ;;  %v646_v17 = vmul.f32 %v1507_v39, %v445_v0  ;;  %v553_v42 = vld [vmem:[%s1495_s9 + $0xe0] sm:$0xff]  ;;  %v554_v49 = vld [vmem:[%s1495_s9 + $0xe8] sm:$0xff]  ;;  %v455_v50 = vld [vmem:[%s1505_s18 + $0xf0] sm:$0xff] }
  0x7c   : > { %v844_v15 = vadd.f32 %v744_v4, %v643_v3  ;;  %v747_v18 = vmul.f32 %v1513_v44, %v545_v1  ;;  %942 = vst [vmem:[%s1527_s21 + $0x78] sm:$0xff] %v842_v9  ;;  %v845_v22 = vadd.f32 %v745_v11, %v644_v5  ;;  %v647_v23 = vmul.f32 %v1507_v39, %v446_v6  ;;  %v555_v55 = vld [vmem:[%s1495_s9 + $0xf0] sm:$0xff]  ;;  %v456_v56 = vld [vmem:[%s1505_s18 + $0xf8] sm:$0xff]  ;;  %v457_v62 = vld [vmem:[%s1505_s18 + $0x100] sm:$0xff] }
  0x7d   : > { %943 = vst [vmem:[%s1527_s21 + $0x80] sm:$0xff] %v843_v10  ;;  %v748_v24 = vmul.f32 %v1513_v44, %v546_v7  ;;  %v648_v25 = vmul.f32 %v1507_v39, %v447_v8  ;;  %v846_v29 = vadd.f32 %v746_v16, %v645_v12  ;;  %v749_v31 = vmul.f32 %v1513_v44, %v547_v13  ;;  %v556_v61 = vld [vmem:[%s1495_s9 + $0xf8] sm:$0xff]  ;;  %v557_v63 = vld [vmem:[%s1495_s9 + $0x100] sm:$0xff]  ;;  %v458_v4 = vld [vmem:[%s1505_s18 + $0x108] sm:$0xff] }
  0x7e   : > { %944 = vst [vmem:[%s1527_s21 + $0x88] sm:$0xff] %v844_v15  ;;  %v847_v30 = vadd.f32 %v747_v18, %v646_v17  ;;  %v649_v32 = vmul.f32 %v1507_v39, %v448_v14  ;;  %945 = vst [vmem:[%s1527_s21 + $0x90] sm:$0xff] %v845_v22  ;;  %v750_v36 = vmul.f32 %v1513_v44, %v548_v19  ;;  %v558_v5 = vld [vmem:[%s1495_s9 + $0x108] sm:$0xff]  ;;  %v459_v6 = vld [vmem:[%s1505_s18 + $0x110] sm:$0xff] }
  0x7f   : > { %v848_v35 = vadd.f32 %v748_v24, %v647_v23  ;;  %v650_v37 = vmul.f32 %v1507_v39, %v449_v20  ;;  %v751_v38 = vmul.f32 %v1513_v44, %v549_v21  ;;  %946 = vst [vmem:[%s1527_s21 + $0x98] sm:$0xff] %v846_v29  ;;  %v849_v43 = vadd.f32 %v749_v31, %v648_v25  ;;  %v559_v11 = vld [vmem:[%s1495_s9 + $0x110] sm:$0xff]  ;;  %v460_v12 = vld [vmem:[%s1505_s18 + $0x118] sm:$0xff]  ;;  %v461_v18 = vld [vmem:[%s1505_s18 + $0x120] sm:$0xff] }
  0x80   : > { %947 = vst [vmem:[%s1527_s21 + $0xa0] sm:$0xff] %v847_v30  ;;  %v651_v45 = vmul.f32 %v1507_v39, %v450_v26  ;;  %v752_v46 = vmul.f32 %v1513_v44, %v550_v27  ;;  %v652_v47 = vmul.f32 %v1507_v39, %v451_v28  ;;  %v850_v51 = vadd.f32 %v750_v36, %v649_v32  ;;  %v560_v17 = vld [vmem:[%s1495_s9 + $0x118] sm:$0xff]  ;;  %v561_v19 = vld [vmem:[%s1495_s9 + $0x120] sm:$0xff]  ;;  %v462_v24 = vld [vmem:[%s1505_s18 + $0x128] sm:$0xff] }
  0x81   : > { %948 = vst [vmem:[%s1527_s21 + $0xa8] sm:$0xff] %v848_v35  ;;  %v851_v52 = vadd.f32 %v751_v38, %v650_v37  ;;  %v753_v53 = vmul.f32 %v1513_v44, %v551_v33  ;;  %v653_v54 = vmul.f32 %v1507_v39, %v452_v34  ;;  %949 = vst [vmem:[%s1527_s21 + $0xb0] sm:$0xff] %v849_v43  ;;  %v562_v25 = vld [vmem:[%s1495_s9 + $0x128] sm:$0xff]  ;;  %v463_v26 = vld [vmem:[%s1505_s18 + $0x130] sm:$0xff] }
  0x82   : > { %v852_v57 = vadd.f32 %v752_v46, %v651_v45  ;;  %v754_v58 = vmul.f32 %v1513_v44, %v552_v40  ;;  %v654_v59 = vmul.f32 %v1507_v39, %v453_v41  ;;  %v755_v60 = vmul.f32 %v1513_v44, %v553_v42  ;;  %950 = vst [vmem:[%s1527_s21 + $0xb8] sm:$0xff] %v850_v51  ;;  %v563_v31 = vld [vmem:[%s1495_s9 + $0x130] sm:$0xff]  ;;  %v464_v32 = vld [vmem:[%s1505_s18 + $0x138] sm:$0xff]  ;;  %v465_v38 = vld [vmem:[%s1505_s18 + $0x140] sm:$0xff] }
  0x83   : > { %951 = vst [vmem:[%s1527_s21 + $0xc0] sm:$0xff] %v851_v52  ;;  %v853_v0 = vadd.f32 %v753_v53, %v652_v47  ;;  %v655_v1 = vmul.f32 %v1507_v39, %v454_v48  ;;  %v756_v2 = vmul.f32 %v1513_v44, %v554_v49  ;;  %v656_v3 = vmul.f32 %v1507_v39, %v455_v50  ;;  %v564_v37 = vld [vmem:[%s1495_s9 + $0x138] sm:$0xff]  ;;  %v565_v40 = vld [vmem:[%s1495_s9 + $0x140] sm:$0xff]  ;;  %v466_v46 = vld [vmem:[%s1505_s18 + $0x148] sm:$0xff] }
  0x84   : > { %952 = vst [vmem:[%s1527_s21 + $0xc8] sm:$0xff] %v852_v57  ;;  %v854_v7 = vadd.f32 %v754_v58, %v653_v54  ;;  %v855_v8 = vadd.f32 %v755_v60, %v654_v59  ;;  %v757_v9 = vmul.f32 %v1513_v44, %v555_v55  ;;  %v657_v10 = vmul.f32 %v1507_v39, %v456_v56  ;;  %v566_v47 = vld [vmem:[%s1495_s9 + $0x148] sm:$0xff]  ;;  %v467_v48 = vld [vmem:[%s1505_s18 + $0x150] sm:$0xff]  ;;  %v468_v54 = vld [vmem:[%s1505_s18 + $0x158] sm:$0xff] }
  0x85   : > { %953 = vst [vmem:[%s1527_s21 + $0xd0] sm:$0xff] %v853_v0  ;;  %v856_v13 = vadd.f32 %v756_v2, %v655_v1  ;;  %v758_v14 = vmul.f32 %v1513_v44, %v556_v61  ;;  %v658_v15 = vmul.f32 %v1507_v39, %v457_v62  ;;  %v759_v16 = vmul.f32 %v1513_v44, %v557_v63  ;;  %v567_v53 = vld [vmem:[%s1495_s9 + $0x150] sm:$0xff]  ;;  %v568_v59 = vld [vmem:[%s1495_s9 + $0x158] sm:$0xff]  ;;  %v469_v60 = vld [vmem:[%s1505_s18 + $0x160] sm:$0xff] }
  0x86   : > { %954 = vst [vmem:[%s1527_s21 + $0xd8] sm:$0xff] %v854_v7  ;;  %955 = vst [vmem:[%s1527_s21 + $0xe0] sm:$0xff] %v855_v8  ;;  %v857_v20 = vadd.f32 %v757_v9, %v656_v3  ;;  %v659_v21 = vmul.f32 %v1507_v39, %v458_v4  ;;  %v760_v22 = vmul.f32 %v1513_v44, %v558_v5  ;;  %v569_v61 = vld [vmem:[%s1495_s9 + $0x160] sm:$0xff]  ;;  %v470_v2 = vld [vmem:[%s1505_s18 + $0x168] sm:$0xff] }
  0x87   : > { %v660_v23 = vmul.f32 %v1507_v39, %v459_v6  ;;  %956 = vst [vmem:[%s1527_s21 + $0xe8] sm:$0xff] %v856_v13  ;;  %v858_v27 = vadd.f32 %v758_v14, %v657_v10  ;;  %v859_v28 = vadd.f32 %v759_v16, %v658_v15  ;;  %v761_v29 = vmul.f32 %v1513_v44, %v559_v11  ;;  %v570_v3 = vld [vmem:[%s1495_s9 + $0x168] sm:$0xff]  ;;  %v471_v4 = vld [vmem:[%s1505_s18 + $0x170] sm:$0xff]  ;;  %v472_v10 = vld [vmem:[%s1505_s18 + $0x178] sm:$0xff] }
  0x88   : > { %v661_v30 = vmul.f32 %v1507_v39, %v460_v12  ;;  %957 = vst [vmem:[%s1527_s21 + $0xf0] sm:$0xff] %v857_v20  ;;  %v860_v33 = vadd.f32 %v760_v22, %v659_v21  ;;  %v762_v34 = vmul.f32 %v1513_v44, %v560_v17  ;;  %v662_v35 = vmul.f32 %v1507_v39, %v461_v18  ;;  %v571_v9 = vld [vmem:[%s1495_s9 + $0x170] sm:$0xff]  ;;  %v572_v15 = vld [vmem:[%s1495_s9 + $0x178] sm:$0xff]  ;;  %v473_v16 = vld [vmem:[%s1505_s18 + $0x180] sm:$0xff] }
  0x89   : > { %v763_v36 = vmul.f32 %v1513_v44, %v561_v19  ;;  %958 = vst [vmem:[%s1527_s21 + $0xf8] sm:$0xff] %v858_v27  ;;  %959 = vst [vmem:[%s1527_s21 + $0x100] sm:$0xff] %v859_v28  ;;  %v861_v41 = vadd.f32 %v761_v29, %v660_v23  ;;  %v663_v42 = vmul.f32 %v1507_v39, %v462_v24  ;;  %v573_v17 = vld [vmem:[%s1495_s9 + $0x180] sm:$0xff]  ;;  %v474_v22 = vld [vmem:[%s1505_s18 + $0x188] sm:$0xff] }
  0x8a   : > { %v764_v43 = vmul.f32 %v1513_v44, %v562_v25  ;;  %v664_v45 = vmul.f32 %v1507_v39, %v463_v26  ;;  %960 = vst [vmem:[%s1527_s21 + $0x108] sm:$0xff] %v860_v33  ;;  %v862_v49 = vadd.f32 %v762_v34, %v661_v30  ;;  %v765_v51 = vmul.f32 %v1513_v44, %v563_v31  ;;  %v574_v23 = vld [vmem:[%s1495_s9 + $0x188] sm:$0xff]  ;;  %v475_v24 = vld [vmem:[%s1505_s18 + $0x190] sm:$0xff]  ;;  %v476_v30 = vld [vmem:[%s1505_s18 + $0x198] sm:$0xff] }
  0x8b   : > { %v863_v50 = vadd.f32 %v763_v36, %v662_v35  ;;  %v665_v52 = vmul.f32 %v1507_v39, %v464_v32  ;;  %961 = vst [vmem:[%s1527_s21 + $0x110] sm:$0xff] %v861_v41  ;;  %v766_v56 = vmul.f32 %v1513_v44, %v564_v37  ;;  %v666_v57 = vmul.f32 %v1507_v39, %v465_v38  ;;  %v575_v29 = vld [vmem:[%s1495_s9 + $0x190] sm:$0xff]  ;;  %v576_v35 = vld [vmem:[%s1495_s9 + $0x198] sm:$0xff]  ;;  %v477_v36 = vld [vmem:[%s1505_s18 + $0x1a0] sm:$0xff] }
  0x8c   : > { %v864_v55 = vadd.f32 %v764_v43, %v663_v42  ;;  %v767_v58 = vmul.f32 %v1513_v44, %v565_v40  ;;  %962 = vst [vmem:[%s1527_s21 + $0x118] sm:$0xff] %v862_v49  ;;  %v865_v62 = vadd.f32 %v765_v51, %v664_v45  ;;  %v667_v63 = vmul.f32 %v1507_v39, %v466_v46  ;;  %v577_v37 = vld [vmem:[%s1495_s9 + $0x1a0] sm:$0xff]  ;;  %v478_v43 = vld [vmem:[%s1505_s18 + $0x1a8] sm:$0xff]  ;;  %v479_v46 = vld [vmem:[%s1505_s18 + $0x1b0] sm:$0xff] }
  0x8d   : > { %963 = vst [vmem:[%s1527_s21 + $0x120] sm:$0xff] %v863_v50  ;;  %v768_v0 = vmul.f32 %v1513_v44, %v566_v47  ;;  %v668_v1 = vmul.f32 %v1507_v39, %v467_v48  ;;  %v866_v5 = vadd.f32 %v766_v56, %v665_v52  ;;  %v769_v7 = vmul.f32 %v1513_v44, %v567_v53  ;;  %v578_v45 = vld [vmem:[%s1495_s9 + $0x1a8] sm:$0xff]  ;;  %v579_v51 = vld [vmem:[%s1495_s9 + $0x1b0] sm:$0xff]  ;;  %v480_v52 = vld [vmem:[%s1505_s18 + $0x1b8] sm:$0xff] }
  0x8e   : > { %964 = vst [vmem:[%s1527_s21 + $0x128] sm:$0xff] %v864_v55  ;;  %v867_v6 = vadd.f32 %v767_v58, %v666_v57  ;;  %v669_v8 = vmul.f32 %v1507_v39, %v468_v54  ;;  %965 = vst [vmem:[%s1527_s21 + $0x130] sm:$0xff] %v865_v62  ;;  %v770_v12 = vmul.f32 %v1513_v44, %v568_v59  ;;  %v580_v57 = vld [vmem:[%s1495_s9 + $0x1b8] sm:$0xff]  ;;  %v481_v58 = vld [vmem:[%s1505_s18 + $0x1c0] sm:$0xff] }
  0x8f   : > { %v868_v11 = vadd.f32 %v768_v0, %v667_v63  ;;  %v670_v13 = vmul.f32 %v1507_v39, %v469_v60  ;;  %v771_v14 = vmul.f32 %v1513_v44, %v569_v61  ;;  %966 = vst [vmem:[%s1527_s21 + $0x138] sm:$0xff] %v866_v5  ;;  %v869_v18 = vadd.f32 %v769_v7, %v668_v1  ;;  %v581_v59 = vld [vmem:[%s1495_s9 + $0x1c0] sm:$0xff]  ;;  %v482_v0 = vld [vmem:[%s1505_s18 + $0x1c8] sm:$0xff]  ;;  %v583_v7 = vld [vmem:[%s1495_s9 + $0x1d0] sm:$0xff] }
  0x90   : > { %967 = vst [vmem:[%s1527_s21 + $0x140] sm:$0xff] %v867_v6  ;;  %v671_v19 = vmul.f32 %v1507_v39, %v470_v2  ;;  %v772_v20 = vmul.f32 %v1513_v44, %v570_v3  ;;  %v672_v21 = vmul.f32 %v1507_v39, %v471_v4  ;;  %v870_v25 = vadd.f32 %v770_v12, %v669_v8  ;;  %v582_v1 = vld [vmem:[%s1495_s9 + $0x1c8] sm:$0xff]  ;;  %v483_v2 = vld [vmem:[%s1505_s18 + $0x1d0] sm:$0xff]  ;;  %v484_v8 = vld [vmem:[%s1505_s18 + $0x1d8] sm:$0xff] }
  0x91   : > { %968 = vst [vmem:[%s1527_s21 + $0x148] sm:$0xff] %v868_v11  ;;  %v871_v26 = vadd.f32 %v771_v14, %v670_v13  ;;  %v773_v27 = vmul.f32 %v1513_v44, %v571_v9  ;;  %v673_v28 = vmul.f32 %v1507_v39, %v472_v10  ;;  %969 = vst [vmem:[%s1527_s21 + $0x150] sm:$0xff] %v869_v18  ;;  %v584_v13 = vld [vmem:[%s1495_s9 + $0x1d8] sm:$0xff]  ;;  %v485_v14 = vld [vmem:[%s1505_s18 + $0x1e0] sm:$0xff] }
  0x92   : > { %v872_v31 = vadd.f32 %v772_v20, %v671_v19  ;;  %v774_v32 = vmul.f32 %v1513_v44, %v572_v15  ;;  %v674_v33 = vmul.f32 %v1507_v39, %v473_v16  ;;  %v775_v34 = vmul.f32 %v1513_v44, %v573_v17  ;;  %970 = vst [vmem:[%s1527_s21 + $0x158] sm:$0xff] %v870_v25  ;;  %v585_v15 = vld [vmem:[%s1495_s9 + $0x1e0] sm:$0xff]  ;;  %v486_v20 = vld [vmem:[%s1505_s18 + $0x1e8] sm:$0xff] }
  0x93   : > { %971 = vst [vmem:[%s1527_s21 + $0x160] sm:$0xff] %v871_v26  ;;  %v873_v38 = vadd.f32 %v773_v27, %v672_v21  ;;  %v675_v40 = vmul.f32 %v1507_v39, %v474_v22  ;;  %v776_v41 = vmul.f32 %v1513_v44, %v574_v23  ;;  %v676_v42 = vmul.f32 %v1507_v39, %v475_v24  ;;  %v586_v21 = vld [vmem:[%s1495_s9 + $0x1e8] sm:$0xff]  ;;  %v487_v22 = vld [vmem:[%s1505_s18 + $0x1f0] sm:$0xff] }
  0x94   : > { %972 = vst [vmem:[%s1527_s21 + $0x168] sm:$0xff] %v872_v31  ;;  %v874_v47 = vadd.f32 %v774_v32, %v673_v28  ;;  %v875_v48 = vadd.f32 %v775_v34, %v674_v33  ;;  %v777_v49 = vmul.f32 %v1513_v44, %v575_v29  ;;  %v677_v50 = vmul.f32 %v1507_v39, %v476_v30  ;;  %v587_v27 = vld [vmem:[%s1495_s9 + $0x1f0] sm:$0xff]  ;;  %v488_v28 = vld [vmem:[%s1505_s18 + $0x1f8] sm:$0xff]  ;;  %v489_v34 = vld [vmem:[%s1505_s18 + $0x200] sm:$0xff] }
  0x95   : > { %973 = vst [vmem:[%s1527_s21 + $0x170] sm:$0xff] %v873_v38  ;;  %v876_v53 = vadd.f32 %v776_v41, %v675_v40  ;;  %v778_v54 = vmul.f32 %v1513_v44, %v576_v35  ;;  %v678_v55 = vmul.f32 %v1507_v39, %v477_v36  ;;  %v779_v56 = vmul.f32 %v1513_v44, %v577_v37  ;;  %v588_v33 = vld [vmem:[%s1495_s9 + $0x1f8] sm:$0xff]  ;;  %v589_v35 = vld [vmem:[%s1495_s9 + $0x200] sm:$0xff]  ;;  %v490_v41 = vld [vmem:[%s1505_s18 + $0x208] sm:$0xff] }
  0x96   : > { %974 = vst [vmem:[%s1527_s21 + $0x178] sm:$0xff] %v874_v47  ;;  %975 = vst [vmem:[%s1527_s21 + $0x180] sm:$0xff] %v875_v48  ;;  %v877_v60 = vadd.f32 %v777_v49, %v676_v42  ;;  %v679_v61 = vmul.f32 %v1507_v39, %v478_v43  ;;  %v780_v62 = vmul.f32 %v1513_v44, %v578_v45  ;;  %v590_v42 = vld [vmem:[%s1495_s9 + $0x208] sm:$0xff]  ;;  %v491_v43 = vld [vmem:[%s1505_s18 + $0x210] sm:$0xff] }
  0x97   : > { %v680_v63 = vmul.f32 %v1507_v39, %v479_v46  ;;  %976 = vst [vmem:[%s1527_s21 + $0x188] sm:$0xff] %v876_v53  ;;  %v878_v3 = vadd.f32 %v778_v54, %v677_v50  ;;  %v879_v4 = vadd.f32 %v779_v56, %v678_v55  ;;  %v781_v5 = vmul.f32 %v1513_v44, %v579_v51  ;;  %v591_v49 = vld [vmem:[%s1495_s9 + $0x210] sm:$0xff]  ;;  %v492_v50 = vld [vmem:[%s1505_s18 + $0x218] sm:$0xff]  ;;  %v493_v56 = vld [vmem:[%s1505_s18 + $0x220] sm:$0xff] }
  0x98   : > { %v681_v6 = vmul.f32 %v1507_v39, %v480_v52  ;;  %977 = vst [vmem:[%s1527_s21 + $0x190] sm:$0xff] %v877_v60  ;;  %v880_v9 = vadd.f32 %v780_v62, %v679_v61  ;;  %v782_v10 = vmul.f32 %v1513_v44, %v580_v57  ;;  %v682_v11 = vmul.f32 %v1507_v39, %v481_v58  ;;  %v592_v55 = vld [vmem:[%s1495_s9 + $0x218] sm:$0xff]  ;;  %v593_v57 = vld [vmem:[%s1495_s9 + $0x220] sm:$0xff]  ;;  %v494_v62 = vld [vmem:[%s1505_s18 + $0x228] sm:$0xff] }
  0x99   : > { %v783_v12 = vmul.f32 %v1513_v44, %v581_v59  ;;  %978 = vst [vmem:[%s1527_s21 + $0x198] sm:$0xff] %v878_v3  ;;  %979 = vst [vmem:[%s1527_s21 + $0x1a0] sm:$0xff] %v879_v4  ;;  %v881_v16 = vadd.f32 %v781_v5, %v680_v63  ;;  %v683_v17 = vmul.f32 %v1507_v39, %v482_v0  ;;  %v594_v63 = vld [vmem:[%s1495_s9 + $0x228] sm:$0xff]  ;;  %v495_v0 = vld [vmem:[%s1505_s18 + $0x230] sm:$0xff] }
  0x9a   : > { %v784_v18 = vmul.f32 %v1513_v44, %v582_v1  ;;  %v684_v19 = vmul.f32 %v1507_v39, %v483_v2  ;;  %980 = vst [vmem:[%s1527_s21 + $0x1a8] sm:$0xff] %v880_v9  ;;  %v882_v23 = vadd.f32 %v782_v10, %v681_v6  ;;  %v785_v25 = vmul.f32 %v1513_v44, %v583_v7  ;;  %v595_v5 = vld [vmem:[%s1495_s9 + $0x230] sm:$0xff]  ;;  %v496_v6 = vld [vmem:[%s1505_s18 + $0x238] sm:$0xff] }
  0x9b   : > { %v883_v24 = vadd.f32 %v783_v12, %v682_v11  ;;  %v685_v26 = vmul.f32 %v1507_v39, %v484_v8  ;;  %981 = vst [vmem:[%s1527_s21 + $0x1b0] sm:$0xff] %v881_v16  ;;  %v786_v30 = vmul.f32 %v1513_v44, %v584_v13  ;;  %v686_v31 = vmul.f32 %v1507_v39, %v485_v14  ;;  %v596_v11 = vld [vmem:[%s1495_s9 + $0x238] sm:$0xff]  ;;  %v497_v12 = vld [vmem:[%s1505_s18 + $0x240] sm:$0xff] }
  0x9c   : > { %v884_v29 = vadd.f32 %v784_v18, %v683_v17  ;;  %v787_v32 = vmul.f32 %v1513_v44, %v585_v15  ;;  %982 = vst [vmem:[%s1527_s21 + $0x1b8] sm:$0xff] %v882_v23  ;;  %v885_v36 = vadd.f32 %v785_v25, %v684_v19  ;;  %v687_v37 = vmul.f32 %v1507_v39, %v486_v20  ;;  %v597_v13 = vld [vmem:[%s1495_s9 + $0x240] sm:$0xff]  ;;  %v498_v18 = vld [vmem:[%s1505_s18 + $0x248] sm:$0xff]  ;;  %v499_v20 = vld [vmem:[%s1505_s18 + $0x250] sm:$0xff] }
  0x9d   : > { %983 = vst [vmem:[%s1527_s21 + $0x1c0] sm:$0xff] %v883_v24  ;;  %v788_v38 = vmul.f32 %v1513_v44, %v586_v21  ;;  %v688_v40 = vmul.f32 %v1507_v39, %v487_v22  ;;  %v886_v45 = vadd.f32 %v786_v30, %v685_v26  ;;  %v789_v47 = vmul.f32 %v1513_v44, %v587_v27  ;;  %v598_v19 = vld [vmem:[%s1495_s9 + $0x248] sm:$0xff]  ;;  %v599_v25 = vld [vmem:[%s1495_s9 + $0x250] sm:$0xff]  ;;  %v500_v26 = vld [vmem:[%s1505_s18 + $0x258] sm:$0xff] }
  0x9e   : > { %984 = vst [vmem:[%s1527_s21 + $0x1c8] sm:$0xff] %v884_v29  ;;  %v887_v46 = vadd.f32 %v787_v32, %v686_v31  ;;  %v689_v48 = vmul.f32 %v1507_v39, %v488_v28  ;;  %985 = vst [vmem:[%s1527_s21 + $0x1d0] sm:$0xff] %v885_v36  ;;  %v790_v52 = vmul.f32 %v1513_v44, %v588_v33  ;;  %v600_v31 = vld [vmem:[%s1495_s9 + $0x258] sm:$0xff]  ;;  %v501_v32 = vld [vmem:[%s1505_s18 + $0x260] sm:$0xff] }
  0x9f   : > { %v888_v51 = vadd.f32 %v788_v38, %v687_v37  ;;  %v690_v53 = vmul.f32 %v1507_v39, %v489_v34  ;;  %v791_v54 = vmul.f32 %v1513_v44, %v589_v35  ;;  %986 = vst [vmem:[%s1527_s21 + $0x1d8] sm:$0xff] %v886_v45  ;;  %v889_v58 = vadd.f32 %v789_v47, %v688_v40  ;;  %v601_v33 = vld [vmem:[%s1495_s9 + $0x260] sm:$0xff]  ;;  %v502_v38 = vld [vmem:[%s1505_s18 + $0x268] sm:$0xff]  ;;  %v603_v47 = vld [vmem:[%s1495_s9 + $0x270] sm:$0xff] }
  0xa0   : > { %987 = vst [vmem:[%s1527_s21 + $0x1e0] sm:$0xff] %v887_v46  ;;  %v691_v59 = vmul.f32 %v1507_v39, %v490_v41  ;;  %v792_v60 = vmul.f32 %v1513_v44, %v590_v42  ;;  %v692_v61 = vmul.f32 %v1507_v39, %v491_v43  ;;  %v890_v1 = vadd.f32 %v790_v52, %v689_v48  ;;  %v602_v40 = vld [vmem:[%s1495_s9 + $0x268] sm:$0xff]  ;;  %v503_v41 = vld [vmem:[%s1505_s18 + $0x270] sm:$0xff]  ;;  %v504_v48 = vld [vmem:[%s1505_s18 + $0x278] sm:$0xff] }
  0xa1   : > { %988 = vst [vmem:[%s1527_s21 + $0x1e8] sm:$0xff] %v888_v51  ;;  %v891_v2 = vadd.f32 %v791_v54, %v690_v53  ;;  %v793_v3 = vmul.f32 %v1513_v44, %v591_v49  ;;  %v693_v4 = vmul.f32 %v1507_v39, %v492_v50  ;;  %989 = vst [vmem:[%s1527_s21 + $0x1f0] sm:$0xff] %v889_v58  ;;  %v604_v53 = vld [vmem:[%s1495_s9 + $0x278] sm:$0xff]  ;;  %v505_v54 = vld [vmem:[%s1505_s18 + $0x280] sm:$0xff] }
  0xa2   : > { %v892_v7 = vadd.f32 %v792_v60, %v691_v59  ;;  %v794_v8 = vmul.f32 %v1513_v44, %v592_v55  ;;  %v694_v9 = vmul.f32 %v1507_v39, %v493_v56  ;;  %v795_v10 = vmul.f32 %v1513_v44, %v593_v57  ;;  %990 = vst [vmem:[%s1527_s21 + $0x1f8] sm:$0xff] %v890_v1  ;;  %v605_v55 = vld [vmem:[%s1495_s9 + $0x280] sm:$0xff]  ;;  %v506_v60 = vld [vmem:[%s1505_s18 + $0x288] sm:$0xff] }
  0xa3   : > { %991 = vst [vmem:[%s1527_s21 + $0x200] sm:$0xff] %v891_v2  ;;  %v893_v14 = vadd.f32 %v793_v3, %v692_v61  ;;  %v695_v15 = vmul.f32 %v1507_v39, %v494_v62  ;;  %v796_v16 = vmul.f32 %v1513_v44, %v594_v63  ;;  %v696_v17 = vmul.f32 %v1507_v39, %v495_v0  ;;  %v606_v61 = vld [vmem:[%s1495_s9 + $0x288] sm:$0xff]  ;;  %v507_v62 = vld [vmem:[%s1505_s18 + $0x290] sm:$0xff] }
  0xa4   : > { %992 = vst [vmem:[%s1527_s21 + $0x208] sm:$0xff] %v892_v7  ;;  %v894_v21 = vadd.f32 %v794_v8, %v693_v4  ;;  %v895_v22 = vadd.f32 %v795_v10, %v694_v9  ;;  %v797_v23 = vmul.f32 %v1513_v44, %v595_v5  ;;  %v697_v24 = vmul.f32 %v1507_v39, %v496_v6  ;;  %v607_v3 = vld [vmem:[%s1495_s9 + $0x290] sm:$0xff]  ;;  %v508_v4 = vld [vmem:[%s1505_s18 + $0x298] sm:$0xff]  ;;  %v509_v10 = vld [vmem:[%s1505_s18 + $0x2a0] sm:$0xff] }
  0xa5   : > { %993 = vst [vmem:[%s1527_s21 + $0x210] sm:$0xff] %v893_v14  ;;  %v896_v27 = vadd.f32 %v796_v16, %v695_v15  ;;  %v798_v28 = vmul.f32 %v1513_v44, %v596_v11  ;;  %v698_v29 = vmul.f32 %v1507_v39, %v497_v12  ;;  %v799_v30 = vmul.f32 %v1513_v44, %v597_v13  ;;  %v608_v9 = vld [vmem:[%s1495_s9 + $0x298] sm:$0xff]  ;;  %v609_v11 = vld [vmem:[%s1495_s9 + $0x2a0] sm:$0xff]  ;;  %v510_v16 = vld [vmem:[%s1505_s18 + $0x2a8] sm:$0xff] }
  0xa6   : > { %994 = vst [vmem:[%s1527_s21 + $0x218] sm:$0xff] %v894_v21  ;;  %995 = vst [vmem:[%s1527_s21 + $0x220] sm:$0xff] %v895_v22  ;;  %v897_v34 = vadd.f32 %v797_v23, %v696_v17  ;;  %v699_v35 = vmul.f32 %v1507_v39, %v498_v18  ;;  %v800_v36 = vmul.f32 %v1513_v44, %v598_v19  ;;  %v610_v17 = vld [vmem:[%s1495_s9 + $0x2a8] sm:$0xff]  ;;  %v511_v18 = vld [vmem:[%s1505_s18 + $0x2b0] sm:$0xff] }
  0xa7   : > { %v700_v37 = vmul.f32 %v1507_v39, %v499_v20  ;;  %996 = vst [vmem:[%s1527_s21 + $0x228] sm:$0xff] %v896_v27  ;;  %v898_v42 = vadd.f32 %v798_v28, %v697_v24  ;;  %v899_v43 = vadd.f32 %v799_v30, %v698_v29  ;;  %v801_v45 = vmul.f32 %v1513_v44, %v599_v25  ;;  %v611_v23 = vld [vmem:[%s1495_s9 + $0x2b0] sm:$0xff]  ;;  %v512_v24 = vld [vmem:[%s1505_s18 + $0x2b8] sm:$0xff]  ;;  %v513_v30 = vld [vmem:[%s1505_s18 + $0x2c0] sm:$0xff] }
  0xa8   : > { %v701_v46 = vmul.f32 %v1507_v39, %v500_v26  ;;  %997 = vst [vmem:[%s1527_s21 + $0x230] sm:$0xff] %v897_v34  ;;  %v900_v49 = vadd.f32 %v800_v36, %v699_v35  ;;  %v802_v50 = vmul.f32 %v1513_v44, %v600_v31  ;;  %v702_v51 = vmul.f32 %v1507_v39, %v501_v32  ;;  %v612_v29 = vld [vmem:[%s1495_s9 + $0x2b8] sm:$0xff]  ;;  %v613_v31 = vld [vmem:[%s1495_s9 + $0x2c0] sm:$0xff]  ;;  %v514_v36 = vld [vmem:[%s1505_s18 + $0x2c8] sm:$0xff] }
  0xa9   : > { %v803_v52 = vmul.f32 %v1513_v44, %v601_v33  ;;  %998 = vst [vmem:[%s1527_s21 + $0x238] sm:$0xff] %v898_v42  ;;  %999 = vst [vmem:[%s1527_s21 + $0x240] sm:$0xff] %v899_v43  ;;  %v901_v56 = vadd.f32 %v801_v45, %v700_v37  ;;  %v703_v57 = vmul.f32 %v1507_v39, %v502_v38  ;;  %v614_v37 = vld [vmem:[%s1495_s9 + $0x2c8] sm:$0xff]  ;;  %v515_v38 = vld [vmem:[%s1505_s18 + $0x2d0] sm:$0xff] }
  0xaa   : > { %v804_v58 = vmul.f32 %v1513_v44, %v602_v40  ;;  %v704_v59 = vmul.f32 %v1507_v39, %v503_v41  ;;  %1000 = vst [vmem:[%s1527_s21 + $0x248] sm:$0xff] %v900_v49  ;;  %v902_v63 = vadd.f32 %v802_v50, %v701_v46  ;;  %v805_v1 = vmul.f32 %v1513_v44, %v603_v47  ;;  %v615_v45 = vld [vmem:[%s1495_s9 + $0x2d0] sm:$0xff]  ;;  %v516_v46 = vld [vmem:[%s1505_s18 + $0x2d8] sm:$0xff] }
  0xab   : > { %v903_v0 = vadd.f32 %v803_v52, %v702_v51  ;;  %v705_v2 = vmul.f32 %v1507_v39, %v504_v48  ;;  %1001 = vst [vmem:[%s1527_s21 + $0x250] sm:$0xff] %v901_v56  ;;  %v806_v6 = vmul.f32 %v1513_v44, %v604_v53  ;;  %v706_v7 = vmul.f32 %v1507_v39, %v505_v54  ;;  %v616_v51 = vld [vmem:[%s1495_s9 + $0x2d8] sm:$0xff]  ;;  %v517_v52 = vld [vmem:[%s1505_s18 + $0x2e0] sm:$0xff] }
  0xac   : > { %v904_v5 = vadd.f32 %v804_v58, %v703_v57  ;;  %v807_v8 = vmul.f32 %v1513_v44, %v605_v55  ;;  %1002 = vst [vmem:[%s1527_s21 + $0x258] sm:$0xff] %v902_v63  ;;  %v905_v12 = vadd.f32 %v805_v1, %v704_v59  ;;  %v707_v13 = vmul.f32 %v1507_v39, %v506_v60  ;;  %v617_v53 = vld [vmem:[%s1495_s9 + $0x2e0] sm:$0xff]  ;;  %v518_v58 = vld [vmem:[%s1505_s18 + $0x2e8] sm:$0xff]  ;;  %v519_v60 = vld [vmem:[%s1505_s18 + $0x2f0] sm:$0xff] }
  0xad   : > { %1003 = vst [vmem:[%s1527_s21 + $0x260] sm:$0xff] %v903_v0  ;;  %v808_v14 = vmul.f32 %v1513_v44, %v606_v61  ;;  %v708_v15 = vmul.f32 %v1507_v39, %v507_v62  ;;  %v906_v19 = vadd.f32 %v806_v6, %v705_v2  ;;  %v809_v21 = vmul.f32 %v1513_v44, %v607_v3  ;;  %v618_v59 = vld [vmem:[%s1495_s9 + $0x2e8] sm:$0xff]  ;;  %v619_v1 = vld [vmem:[%s1495_s9 + $0x2f0] sm:$0xff]  ;;  %v520_v2 = vld [vmem:[%s1505_s18 + $0x2f8] sm:$0xff] }
  0xae   : > { %1004 = vst [vmem:[%s1527_s21 + $0x268] sm:$0xff] %v904_v5  ;;  %v907_v20 = vadd.f32 %v807_v8, %v706_v7  ;;  %v709_v22 = vmul.f32 %v1507_v39, %v508_v4  ;;  %1005 = vst [vmem:[%s1527_s21 + $0x270] sm:$0xff] %v905_v12  ;;  %v810_v26 = vmul.f32 %v1513_v44, %v608_v9  ;;  %v620_v7 = vld [vmem:[%s1495_s9 + $0x2f8] sm:$0xff]  ;;  %v521_v8 = vld [vmem:[%s1505_s18 + $0x300] sm:$0x1f] }
  0xaf   : > { %v908_v25 = vadd.f32 %v808_v14, %v707_v13  ;;  %v710_v27 = vmul.f32 %v1507_v39, %v509_v10  ;;  %v811_v28 = vmul.f32 %v1513_v44, %v609_v11  ;;  %1006 = vst [vmem:[%s1527_s21 + $0x278] sm:$0xff] %v906_v19  ;;  %v909_v32 = vadd.f32 %v809_v21, %v708_v15  ;;  %v621_v9 = vld [vmem:[%s1495_s9 + $0x300] sm:$0x1f]  ;;  %v522_v14 = vld [vmem:[%s1505_s18 + $0x308] sm:$0x1f] }
  0xb0   : > { %1007 = vst [vmem:[%s1527_s21 + $0x280] sm:$0xff] %v907_v20  ;;  %v711_v33 = vmul.f32 %v1507_v39, %v510_v16  ;;  %v812_v34 = vmul.f32 %v1513_v44, %v610_v17  ;;  %v712_v35 = vmul.f32 %v1507_v39, %v511_v18  ;;  %v910_v40 = vadd.f32 %v810_v26, %v709_v22  ;;  %v622_v15 = vld [vmem:[%s1495_s9 + $0x308] sm:$0x1f]  ;;  %v523_v16 = vld [vmem:[%s1505_s18 + $0x310] sm:$0x1f] }
  0xb1   : > { %1008 = vst [vmem:[%s1527_s21 + $0x288] sm:$0xff] %v908_v25  ;;  %v911_v41 = vadd.f32 %v811_v28, %v710_v27  ;;  %v813_v42 = vmul.f32 %v1513_v44, %v611_v23  ;;  %v713_v43 = vmul.f32 %v1507_v39, %v512_v24  ;;  %1009 = vst [vmem:[%s1527_s21 + $0x290] sm:$0xff] %v909_v32  ;;  %v623_v21 = vld [vmem:[%s1495_s9 + $0x310] sm:$0x1f]  ;;  %v524_v22 = vld [vmem:[%s1505_s18 + $0x318] sm:$0x1f] }
  0xb2   : > { %v912_v47 = vadd.f32 %v812_v34, %v711_v33  ;;  %v814_v48 = vmul.f32 %v1513_v44, %v612_v29  ;;  %v714_v49 = vmul.f32 %v1507_v39, %v513_v30  ;;  %v815_v50 = vmul.f32 %v1513_v44, %v613_v31  ;;  %1010 = vst [vmem:[%s1527_s21 + $0x298] sm:$0xff] %v910_v40  ;;  %v624_v27 = vld [vmem:[%s1495_s9 + $0x318] sm:$0x1f] }
  0xb3   : > { %1011 = vst [vmem:[%s1527_s21 + $0x2a0] sm:$0xff] %v911_v41  ;;  %v913_v54 = vadd.f32 %v813_v42, %v712_v35  ;;  %v715_v55 = vmul.f32 %v1507_v39, %v514_v36  ;;  %v816_v56 = vmul.f32 %v1513_v44, %v614_v37  ;;  %v716_v57 = vmul.f32 %v1507_v39, %v515_v38 }
  0xb4   : > { %1012 = vst [vmem:[%s1527_s21 + $0x2a8] sm:$0xff] %v912_v47  ;;  %v914_v61 = vadd.f32 %v814_v48, %v713_v43  ;;  %v915_v62 = vadd.f32 %v815_v50, %v714_v49  ;;  %v817_v63 = vmul.f32 %v1513_v44, %v615_v45  ;;  %v717_v0 = vmul.f32 %v1507_v39, %v516_v46 }
  0xb5   : > { %1013 = vst [vmem:[%s1527_s21 + $0x2b0] sm:$0xff] %v913_v54  ;;  %v916_v3 = vadd.f32 %v816_v56, %v715_v55  ;;  %v818_v4 = vmul.f32 %v1513_v44, %v616_v51  ;;  %v718_v5 = vmul.f32 %v1507_v39, %v517_v52  ;;  %v819_v6 = vmul.f32 %v1513_v44, %v617_v53 }
  0xb6   : > { %1014 = vst [vmem:[%s1527_s21 + $0x2b8] sm:$0xff] %v914_v61  ;;  %1015 = vst [vmem:[%s1527_s21 + $0x2c0] sm:$0xff] %v915_v62  ;;  %v917_v10 = vadd.f32 %v817_v63, %v716_v57  ;;  %v719_v11 = vmul.f32 %v1507_v39, %v518_v58  ;;  %v820_v12 = vmul.f32 %v1513_v44, %v618_v59 }
  0xb7   : > { %v720_v13 = vmul.f32 %v1507_v39, %v519_v60  ;;  %1016 = vst [vmem:[%s1527_s21 + $0x2c8] sm:$0xff] %v916_v3  ;;  %v918_v17 = vadd.f32 %v818_v4, %v717_v0  ;;  %v919_v18 = vadd.f32 %v819_v6, %v718_v5  ;;  %v821_v19 = vmul.f32 %v1513_v44, %v619_v1 }
  0xb8   : > { %v721_v20 = vmul.f32 %v1507_v39, %v520_v2  ;;  %1017 = vst [vmem:[%s1527_s21 + $0x2d0] sm:$0xff] %v917_v10  ;;  %v920_v23 = vadd.f32 %v820_v12, %v719_v11  ;;  %v822_v24 = vmul.f32 %v1513_v44, %v620_v7  ;;  %v722_v25 = vmul.f32 %v1507_v39, %v521_v8 }
  0xb9   : > { %v823_v26 = vmul.f32 %v1513_v44, %v621_v9  ;;  %1018 = vst [vmem:[%s1527_s21 + $0x2d8] sm:$0xff] %v918_v17  ;;  %1019 = vst [vmem:[%s1527_s21 + $0x2e0] sm:$0xff] %v919_v18  ;;  %v921_v28 = vadd.f32 %v821_v19, %v720_v13  ;;  %v723_v29 = vmul.f32 %v1507_v39, %v522_v14 }
  0xba   : > { %v824_v30 = vmul.f32 %v1513_v44, %v622_v15  ;;  %v724_v31 = vmul.f32 %v1507_v39, %v523_v16  ;;  %1020 = vst [vmem:[%s1527_s21 + $0x2e8] sm:$0xff] %v920_v23  ;;  %v922_v32 = vadd.f32 %v822_v24, %v721_v20  ;;  %v825_v34 = vmul.f32 %v1513_v44, %v623_v21 }
  0xbb   : > { %v923_v33 = vadd.f32 %v823_v26, %v722_v25  ;;  %v725_v35 = vmul.f32 %v1507_v39, %v524_v22  ;;  %1021 = vst [vmem:[%s1527_s21 + $0x2f0] sm:$0xff] %v921_v28  ;;  %v826_v37 = vmul.f32 %v1513_v44, %v624_v27 }
  0xbc   : > { %v924_v36 = vadd.f32 %v824_v30, %v723_v29  ;;  %1022 = vst [vmem:[%s1527_s21 + $0x2f8] sm:$0xff] %v922_v32  ;;  %v925_v38 = vadd.f32 %v825_v34, %v724_v31 }
  0xbd   : > { %1023 = vst [vmem:[%s1527_s21 + $0x300] sm:$0x1f] %v923_v33  ;;  %v926_v40 = vadd.f32 %v826_v37, %v725_v35 }
  0xbe   : > { %1024 = vst [vmem:[%s1527_s21 + $0x308] sm:$0x1f] %v924_v36  ;;  %1025 = vst [vmem:[%s1527_s21 + $0x310] sm:$0x1f] %v925_v38 }
  0xbf   : > { %1026 = vst [vmem:[%s1527_s21 + $0x318] sm:$0x1f] %v926_v40 }
  0xc0 PF: > { %p11_p6 = scmp.ge.s32.totalorder %s1247_s16, 4   ;;  %s2029_s12 = smov %s1201_s13 }
  0xc1   : > { %s2030_s13 = smov %s1257_s19  ;;  %s2031_s14 = smov %s1247_s16 }
  0xc2   :  { %13 = sbr.rel (!%p11_p6) target bundleno = 2 (0x2), region = 98 }
  0xc9   :  { %1048 = vsyncpa [#allocation3], 1 }
  0xca   :  { %1050 = vsyncpa [#allocation3 + $0x1], 1 }

</bundles_post_ra>
